<compile_context>
chip_gen: v6e
topology: v6e:2x2x1
jax: 0.10.0
libtpu: 0.0.40
codegen_flags: <defaults>
</compile_context>

<pallas_src>
import functools

import jax
import jax.numpy as jnp
from jax.experimental import pallas as pl
from jax.experimental.pallas import tpu as pltpu


def _round_up(x, m):
    return ((x + m - 1) // m) * m


def _choose_tn(D, tn):
    """Feature tile: either the full D, or a 128-multiple divisor of D."""
    tn = min(tn, D)
    if tn == D:
        return tn
    if D % tn != 0 or tn % 128 != 0:
        return D  # fall back to untiled feature dim
    return tn


def prepare_swiglu_params(wg, bg, wl, bl, *, tn=256):
    """One-time (init-time) param prep: transpose + fuse gate/linear weights.

    wg, wl: (dim_out, dim_in) in PyTorch nn.Linear layout; bg, bl: (dim,).
    Returns (w_fused (D, 2D), b_fused (1, 2D), tn) where for every feature tile
    j the columns [j*2*tn : j*2*tn + tn] are the gate columns and the next tn
    columns are the linear columns for the same output features.
    """
    D = wg.shape[1]
    tn = _choose_tn(D, tn)
    nj = D // tn
    wg_t = wg.T  # (D_in, D_out) — done once, not per forward call
    wl_t = wl.T
    w_fused = jnp.stack(
        [wg_t.reshape(D, nj, tn), wl_t.reshape(D, nj, tn)], axis=2
    ).reshape(D, 2 * D)
    b_fused = jnp.stack(
        [bg.reshape(nj, tn), bl.reshape(nj, tn)], axis=1
    ).reshape(1, 2 * D)
    return w_fused, b_fused, tn


def _swiglu_kernel(beta_ref, x_ref, w_ref, b_ref, o_ref):
    """Compute one (tm, tn) output tile.

    x_ref: (tm, D)     row tile (resident across the feature axis j)
    w_ref: (D, 2*tn)   fused [Wg_j | Wl_j] column tile
    b_ref: (1, 2*tn)   fused [bg_j | bl_j]
    beta : scalar (SMEM, scalar-prefetch)
    """
    tn = o_ref.shape[-1]
    # Single MXU matmul for both projections, f32 accumulation.
    acc = jnp.dot(x_ref[...], w_ref[...], preferred_element_type=jnp.float32)
    acc = acc + b_ref[...].astype(jnp.float32)
    g = acc[:, :tn]
    l = acc[:, tn:]
    beta = beta_ref[0]
    # Swish epilogue: sigmoid -> EUP, muls -> VALU; hidden under the MXU stream.
    o_ref[...] = (g * jax.nn.sigmoid(beta * g) * l).astype(o_ref.dtype)


@functools.partial(jax.jit, static_argnames=("tm", "tn"))
def swiglu_fused(x, w_fused, b_fused, beta, *, tm=256, tn=None):
    """SwiGLU forward. x: (batch, seq, dim); w_fused/b_fused from prepare_swiglu_params.

    tm: row tile (sweep 128/256/512; 128 is enough on v5e).
    tn: feature tile — must match the tn used in prepare_swiglu_params.
    """
    B, S, D = x.shape
    if tn is None:
        tn = D
    assert w_fused.shape == (D, 2 * D), "w_fused must be (D, 2D)"
    assert b_fused.shape == (1, 2 * D), "b_fused must be (1, 2D)"
    assert D % tn == 0, "tn must divide D (use the tn returned by prepare)"

    N = B * S
    # Clamp the row tile to the (8-aligned) problem size, pad ragged N.
    tm = max(8, min(tm, _round_up(N, 8)))
    n_pad = _round_up(N, tm)
    x2 = x.reshape(N, D)
    if n_pad != N:
        x2 = jnp.pad(x2, ((0, n_pad - N), (0, 0)))
    beta_arr = jnp.reshape(beta, (1,)).astype(jnp.float32)

    grid = (n_pad // tm, D // tn)

    # VMEM budget: double-buffered tiles + f32 accumulator + margin, clamped to
    # a safe fraction of the chip's physical VMEM (64 MiB on v7x, 128 on v5e/v6e).
    item = x.dtype.itemsize
    tile_bytes = (
        2 * (tm * D + D * 2 * tn + 8 * 2 * tn + tm * tn) * item  # double-buffered blocks
        + tm * 2 * tn * 4                                        # in-kernel f32 acc
    )
    try:
        vmem_cap = int(pltpu.get_tpu_info().vmem_capacity_bytes)
    except Exception:  # pragma: no cover - fallback when query unavailable
        vmem_cap = 64 << 20
    vmem_limit = int(min(max(tile_bytes + (8 << 20), 32 << 20), (3 * vmem_cap) // 4))

    out = pl.pallas_call(
        _swiglu_kernel,
        out_shape=jax.ShapeDtypeStruct((n_pad, D), x.dtype),
        grid_spec=pltpu.PrefetchScalarGridSpec(
            num_scalar_prefetch=1,  # beta lands in SMEM
            grid=grid,
            in_specs=[
                # x tile: independent of j -> stays resident across feature tiles.
                pl.BlockSpec((tm, D), lambda i, j, beta: (i, 0)),
                # fused weight tile: (D, 2*tn), streamed over j.
                pl.BlockSpec((D, 2 * tn), lambda i, j, beta: (0, j)),
                # fused bias tile.
                pl.BlockSpec((1, 2 * tn), lambda i, j, beta: (0, j)),
            ],
            out_specs=pl.BlockSpec((tm, tn), lambda i, j, beta: (i, j)),
        ),
        compiler_params=pltpu.CompilerParams(
            dimension_semantics=("parallel", "parallel"),
            vmem_limit_bytes=vmem_limit,
        ),
    )(beta_arr, x2, w_fused, b_fused)

    if n_pad != N:
        out = out[:N]
    return out.reshape(B, S, D)


def swiglu_ref(x, wg, bg, wl, bl, beta):
    g = jnp.einsum("bsd,od->bso", x, wg) + bg
    l = jnp.einsum("bsd,od->bso", x, wl) + bl
    return g * jax.nn.sigmoid(beta * g) * l


def _run_case(key, batch, seq, dim, tm, tn_req):
    k1, k2, k3, k4, k5 = jax.random.split(key, 5)
    x = jax.random.normal(k1, (batch, seq, dim), dtype=jnp.float32)
    # nn.Linear(dim, dim): weight (out, in), bias (out,)
    wg = jax.random.normal(k2, (dim, dim), dtype=jnp.float32) * 0.1
    bg = jax.random.normal(k3, (dim,), dtype=jnp.float32) * 0.1
    wl = jax.random.normal(k4, (dim, dim), dtype=jnp.float32) * 0.1
    bl = jax.random.normal(k5, (dim,), dtype=jnp.float32) * 0.1
    beta = jnp.float32(1.0)

    # One-time param prep (model init), then kernel-only forward.
    w_fused, b_fused, tn = prepare_swiglu_params(wg, bg, wl, bl, tn=tn_req)
    out = swiglu_fused(x, w_fused, b_fused, beta, tm=tm, tn=tn)
    jax.block_until_ready(out)

    ref = swiglu_ref(x, wg, bg, wl, bl, beta)
    assert out.shape == (batch, seq, dim)
    assert jnp.allclose(out, ref, atol=1e-5, rtol=1e-5), (
        f"mismatch vs reference for shape {(batch, seq, dim)}"
    )


if __name__ == "__main__":
    key = jax.random.PRNGKey(0)
    k_a, k_b = jax.random.split(key)

    # Small shape matching the module spec (dim below 128 -> full-dim blocks).
    _run_case(k_a, batch=2, seq=8, dim=32, tm=256, tn_req=256)

    # Exercise the 2-D grid, feature tiling (tn=128 < D) and ragged-row padding.
    _run_case(k_b, batch=2, seq=10, dim=256, tm=256, tn_req=128)

    print("KERNEL_OK")
</pallas_src>

<mosaic_0001>
module attributes {stable_mosaic.version = 11 : i64} {
  func.func @_swiglu_kernel(%arg0: i32, %arg1: i32, %arg2: memref<1xf32, #tpu.memory_space<smem>>, %arg3: memref<16x32xf32, #tpu.memory_space<vmem>>, %arg4: memref<32x64xf32, #tpu.memory_space<vmem>>, %arg5: memref<1x64xf32, #tpu.memory_space<vmem>>, %arg6: memref<16x32xf32, #tpu.memory_space<vmem>>) attributes {dimension_semantics = [#tpu.dimension_semantics<parallel>, #tpu.dimension_semantics<parallel>], iteration_bounds = array<i64: 1, 1>, scalar_prefetch = 1 : i64, scratch_operands = 0 : i64, tpu.core_type = #tpu.core_type<tc>, window_params = [{transform_indices = @transform_0, window_bounds = array<i64: 16, 32>}, {transform_indices = @transform_1, window_bounds = array<i64: 32, 64>}, {transform_indices = @transform_2, window_bounds = array<i64: 1, 64>}, {transform_indices = @transform_3, window_bounds = array<i64: 16, 32>}]} {
    %c0 = arith.constant 0 : index
    %c0_0 = arith.constant 0 : index
    %0 = vector.load %arg3[%c0, %c0_0] : memref<16x32xf32, #tpu.memory_space<vmem>>, vector<16x32xf32>
    %c0_1 = arith.constant 0 : index
    %c0_2 = arith.constant 0 : index
    %1 = vector.load %arg4[%c0_1, %c0_2] : memref<32x64xf32, #tpu.memory_space<vmem>>, vector<32x64xf32>
    %cst = arith.constant dense<0.000000e+00> : vector<16x64xf32>
    %2 = tpu.matmul %0, %1, %cst {dimension_numbers = #tpu.dot_dimension_numbers<[1], [0], [0], [1], [0, 0, 1, 1], [], []>} : vector<16x32xf32>, vector<32x64xf32>, vector<16x64xf32> -> vector<16x64xf32>
    %c0_3 = arith.constant 0 : index
    %c0_4 = arith.constant 0 : index
    %3 = vector.load %arg5[%c0_3, %c0_4] : memref<1x64xf32, #tpu.memory_space<vmem>>, vector<1x64xf32>
    %4 = vector.broadcast %3 : vector<1x64xf32> to vector<16x64xf32>
    %5 = arith.addf %2, %4 : vector<16x64xf32>
    %6 = vector.extract_strided_slice %5 {offsets = [0, 0], sizes = [16, 32], strides = [1, 1]} : vector<16x64xf32> to vector<16x32xf32>
    %7 = vector.extract_strided_slice %5 {offsets = [0, 32], sizes = [16, 32], strides = [1, 1]} : vector<16x64xf32> to vector<16x32xf32>
    %c0_5 = arith.constant 0 : index
    %8 = memref.load %arg2[%c0_5] : memref<1xf32, #tpu.memory_space<smem>>
    %9 = vector.broadcast %8 : f32 to vector<16x32xf32>
    %10 = arith.mulf %9, %6 : vector<16x32xf32>
    %11 = arith.negf %10 : vector<16x32xf32>
    %12 = math.exp %11 : vector<16x32xf32>
    %cst_6 = arith.constant 1.000000e+00 : f32
    %13 = vector.broadcast %cst_6 : f32 to vector<16x32xf32>
    %14 = arith.addf %13, %12 : vector<16x32xf32>
    %15 = arith.divf %13, %14 : vector<16x32xf32>
    %16 = arith.mulf %6, %15 : vector<16x32xf32>
    %17 = arith.mulf %16, %7 : vector<16x32xf32>
    %c0_7 = arith.constant 0 : index
    %c0_8 = arith.constant 0 : index
    %18 = vector.load %arg6[%c0_7, %c0_8] : memref<16x32xf32, #tpu.memory_space<vmem>>, vector<16x32xf32>
    tpu.vector_store %arg6[%c0_7, %c0_8], %17 {strides = array<i32>} : memref<16x32xf32, #tpu.memory_space<vmem>>, vector<16x32xf32>,
    return
  }
  func.func @transform_0(%arg0: i32, %arg1: i32, %arg2: memref<1xf32, #tpu.memory_space<smem>>) -> (i32, i32) {
    %c0_i32 = arith.constant 0 : i32
    %c0_i32_0 = arith.constant 0 : i32
    return %arg0, %c0_i32 : i32, i32
  }
  func.func @transform_1(%arg0: i32, %arg1: i32, %arg2: memref<1xf32, #tpu.memory_space<smem>>) -> (i32, i32) {
    %c0_i32 = arith.constant 0 : i32
    %c0_i32_0 = arith.constant 0 : i32
    return %c0_i32, %arg1 : i32, i32
  }
  func.func @transform_2(%arg0: i32, %arg1: i32, %arg2: memref<1xf32, #tpu.memory_space<smem>>) -> (i32, i32) {
    %c0_i32 = arith.constant 0 : i32
    %c0_i32_0 = arith.constant 0 : i32
    return %c0_i32, %arg1 : i32, i32
  }
  func.func @transform_3(%arg0: i32, %arg1: i32, %arg2: memref<1xf32, #tpu.memory_space<smem>>) -> (i32, i32) {
    %c0_i32 = arith.constant 0 : i32
    return %arg0, %arg1 : i32, i32
  }
}

</mosaic_0001>

<bundles_post_ra>
// kernel: swiglu_fused.1
= control target key start
LH: loop header
LB: loop body
LE: loop exit
PB: predicated region body
PF: predicated region fallthrough
CT: control target
= control target key end

     0   :  { %10 = vsyncpa [#allocation5], 0  ;;  %s349_s0 = inlined_call_operand.<no memory space> [shape: f32[1], index: 0, kind: input, shape index: {}]   ;;  %s350_s1 = inlined_call_operand.hbm [shape: f32[16,32], index: 1, kind: input, shape index: {}]   ;;  %s351_s2 = inlined_call_operand.hbm [shape: f32[32,64], index: 2, kind: input, shape index: {}]   ;;  %s352_s3 = inlined_call_operand.vmem [shape: f32[1,64], index: 3, kind: input, shape index: {}]   ;;  %s353_s4 = inlined_call_operand.hbm [shape: f32[16,32], index: 4, kind: output, shape index: {}]  }
   0x1   :  { %11 = vsyncpa [#allocation8], 0 }
   0x2   :  { %12 = vsyncpa [#allocation6], 0  ;;  %s290_s15 = smov [#allocation4]  }
   0x3   :  { %s18_s16 = sshll.u32 %s290_s15, 4  ;;  %s19_s16 = int_to_ptr.vmem [resolvable:$true] %s18_s16 }
   0x4   :  { %s232_s17 = scalar_lea.vmem %s19_s16, 256  ;;  %p237_p1 = scmp.lt.s32.totalorder %s19_s16, %s19_s16 }
   0x5   :  { %p233_p0 = scmp.ne.s32.totalorder %s19_s16, %s232_s17  ;;  %p238_p2 = scmp.lt.s32.totalorder %s232_s17, %s232_s17 }
   0x7   :  { %p239_p3 = por %p238_p2, %p237_p1 }
   0x9   :  { %p240_p4 = pnand %p239_p3, %p233_p0 }
   0xb   :  { %243 = shalt.err (!%p240_p4)
}
   0xc   :  { %s291_s18 = smov 128   ;;  %s292_s19 = smov 8  }
   0xd   :  { %24 = dma.hbm_to_vmem [thread:$0]  %s350_s1, 256, %s19_s16, [#allocation5], %s291_s18, %s291_s18, %s292_s19  }
   0xe   :  { %s293_s22 = smov [#allocation7]  }
   0xf   :  { %s30_s23 = sshll.u32 %s293_s22, 4  ;;  %s31_s23 = int_to_ptr.vmem [resolvable:$true] %s30_s23 }
  0x10   :  { %s252_s24 = scalar_lea.vmem %s31_s23, 512  ;;  %p257_p6 = scmp.lt.s32.totalorder %s31_s23, %s31_s23 }
  0x11   :  { %p253_p5 = scmp.ne.s32.totalorder %s31_s23, %s252_s24  ;;  %p258_p7 = scmp.lt.s32.totalorder %s252_s24, %s252_s24 }
  0x13   :  { %p259_p8 = por %p258_p7, %p257_p6 }
  0x15   :  { %p260_p9 = pnand %p259_p8, %p253_p5 }
  0x17   :  { %263 = shalt.err (!%p260_p9)
}
  0x18   :  { %36 = dma.hbm_to_vmem [thread:$0]  %s351_s2, 512, %s31_s23, [#allocation8], %s291_s18, %s291_s18, %s292_s19  }
  0x19   :  { %284 = dma.done.wait [#allocation5], 256  }
  0x1a   :  { %285 = vsyncadd [#allocation5], 4294967040 }
  0x1b   :  { %286 = dma.done.wait [#allocation8], 512  }
  0x1c   :  { %287 = vsyncadd [#allocation8], 4294966784  ;;  %vm58_vm0 = vcmask 261120   ;;  %v50_v0 = vld [vmem:[#allocation7 + $0x18] sm:$0xff]  ;;  %v49_v1 = vld [vmem:[#allocation7 + $0x10] sm:$0xff]  ;;  %s294_s27 = smov 96   ;;  %v141_v11 = vstv %s349_s0 }
  0x1d   :  { %199 = vmatprep.subr.mxu0 %v50_v0  ;;  %v45_v2 = vld [vmem:[#allocation4] sm:$0xff]  ;;  %v48_v3 = vld [vmem:[#allocation7 + $0x8] sm:$0xff]  ;;  %v47_v4 = vld [vmem:[#allocation7] sm:$0xff] }
  0x1e   :  { %200 = vmatpush3.msra.mxu0 %v50_v0  ;;  %207 = vmatprep.mubr.msk.f32.mxu0 %vm58_vm0, %v45_v2  ;;  %v46_v5 = vld [vmem:[#allocation4 + $0x8] sm:$0xff]  ;;  %v188_v7 = vld [vmem:[%s352_s3] ss:$0 sm:$0xff]  ;;  %s295_s3 = smov [#allocation9]  }
  0x1f   :  { %201 = vmatprep.subr.mxu0 %v49_v1  ;;  %s175_s30 = sshll.u32 %s295_s3, 4  ;;  %s176_s30 = int_to_ptr.vmem [resolvable:$true] %s175_s30 }
  0x20   :  { %202 = vmatpush3.msra.mxu0 %v49_v1  ;;  %s264_s0 = scalar_lea.vmem %s176_s30, 256  ;;  %p269_p11 = scmp.lt.s32.totalorder %s176_s30, %s176_s30 }
  0x21   :  { %203 = vmatprep.subr.mxu0 %v48_v3  ;;  %p265_p10 = scmp.ne.s32.totalorder %s176_s30, %s264_s0  ;;  %p270_p12 = scmp.lt.s32.totalorder %s264_s0, %s264_s0 }
  0x22   :  { %204 = vmatpush3.msra.mxu0 %v48_v3 }
  0x23   :  { %205 = vmatprep.subr.mxu0 %v47_v4  ;;  %p271_p13 = por %p270_p12, %p269_p11 }
  0x24   :  { %206 = vmatpush3.msra.mxu0 %v47_v4 }
  0x25   :  { %208 = vmatmul.mubr.msk.f32.vlgmr.msra.gmra.mxu0 %vm58_vm0, %v46_v5  ;;  %p272_p0 = pnand %p271_p13, %p265_p10 }
  0xe5   :  { %v209_v6 = vpop.f32.mrf.mxu0 }
  0xe6   :  { %v137_v10 = vadd.f32 %v209_v6, %v188_v7 }
  0xe7   :  { %v131_v8 = vpop.f32.mrf.mxu0 }
  0xe8   :  { %v132_v9 = vadd.f32 %v188_v7, %v131_v8  ;;  %v143_v13 = vmul.f32 %v141_v11, %v137_v10 }
  0xea   :  { %160 = vrot.lane.b32.xlu0 %v132_v9, %s294_s27  ;;  %v142_v12 = vmul.f32 %v141_v11, %v132_v9  ;;  %v192_v15 = vmul.f32 -1.442695, %v143_v13 }
  0xec   :  { %v191_v14 = vmul.f32 -1.442695, %v142_v12 }
  0xee   :  { %162 = vrot.lane.b32.xlu0 %v137_v10, %s294_s27  ;;  %216 = vpow2.f32 %v191_v14 }
  0xef   :  { %218 = vpow2.f32 %v192_v15 }
  0xfb   :  { %v217_v16 = vpop.eup %216 }
  0xfc   :  { %v150_v17 = vadd.f32 1.0, %v217_v16  ;;  %v219_v18 = vpop.eup %218 }
  0xfd   :  { %v151_v19 = vadd.f32 1.0, %v219_v18 }
  0xfe   :  { %220 = vrcp.f32 %v150_v17 }
  0xff   :  { %222 = vrcp.f32 %v151_v19 }
 0x10b   :  { %v221_v20 = vpop.eup %220 }
 0x10c   :  { %v156_v21 = vmul.f32 %v221_v20, %v132_v9  ;;  %v223_v22 = vpop.eup %222 }
 0x10d   :  { %v157_v25 = vmul.f32 %v223_v22, %v137_v10 }
 0x15c   :  { %v161_v23 = vpop.permute.xlu0 %160 }
 0x15d   :  { %v166_v24 = vmul.f32 %v161_v23, %v156_v21 }
 0x15f   :  { %168 = vst.msk [vmem:[#allocation9] sm:$0xff] %vm58_vm0, %v166_v24 }
 0x160   :  { %v163_v26 = vpop.permute.xlu0 %162 }
 0x161   :  { %v167_v27 = vmul.f32 %v163_v26, %v157_v25 }
 0x163   :  { %169 = vst.msk [vmem:[#allocation9 + $0x8] sm:$0xff] %vm58_vm0, %v167_v27 }
 0x164   :  { %275 = shalt.err (!%p272_p0)
}
 0x165   :  { %181 = dma.vmem_to_hbm [thread:$0]  %s176_s30, 256, %s353_s4, [#allocation6], %s291_s18, %s291_s18, %s292_s19  }
 0x166   :  { %288 = dma.done.wait [#allocation6], 256  }
 0x167   :  { %289 = vsyncadd [#allocation6], 4294967040 }
 0x168   :  { %185 = vsyncpa [#allocation5], 1 }
 0x169   :  { %186 = vsyncpa [#allocation8], 1 }
 0x16a   :  { %187 = vsyncpa [#allocation6], 1 }

</bundles_post_ra>
